<compile_context>
chip_gen: v7x
topology: tpu7x:2x2x1
jax: 0.10.0
libtpu: 0.0.40
codegen_flags: <defaults>
</compile_context>

<pallas_src>
import functools

import jax
import jax.numpy as jnp
from jax.experimental import pallas as pl
from jax.experimental.pallas import tpu as pltpu


def _round_up(x, m):
    return (x + m - 1) // m * m


def _choose_batch_tile(B, C, itemsize, target_tile_bytes=2 * 1024 * 1024):
    """Pick a batch tile so one input tile is ~target_tile_bytes and the
    double-buffered pipeline footprint (2 inputs x 2 buffers) stays small
    enough for v7x's reduced VMEM."""
    # sublane packing multiple: f32 -> 8, bf16 -> 16, int8/fp8 -> 32
    sublane = 8 if itemsize >= 4 else (16 if itemsize == 2 else 32)
    rows = target_tile_bytes // max(1, C * itemsize)
    rows = max(sublane, (rows // sublane) * sublane)
    rows = min(rows, _round_up(B, sublane))
    return rows


def _distill_kl_kernel(ys_ref, yt_ref, out_ref, *, inv_t):
    """One batch tile -> one (1, 128) row whose lane 0 holds the tile's partial KL sum."""
    ys = ys_ref[...].astype(jnp.float32) * inv_t
    yt = yt_ref[...].astype(jnp.float32) * inv_t

    # Stable log-softmax of student logits over the class (lane) axis.
    zs = ys - jnp.max(ys, axis=-1, keepdims=True)
    lse_s = jnp.log(jnp.sum(jnp.exp(zs), axis=-1, keepdims=True))
    log_p_s = zs - lse_s

    # Stable softmax / log-softmax of teacher logits.
    zt = yt - jnp.max(yt, axis=-1, keepdims=True)
    et = jnp.exp(zt)
    st = jnp.sum(et, axis=-1, keepdims=True)
    log_p_t = zt - jnp.log(st)

    # sum_j p_t*(log p_t - log p_s) = (1/st) * sum_j et*(log p_t - log p_s)
    # -> one per-row divide instead of a full-tile p_t multiply.
    row_num = jnp.sum(et * (log_p_t - log_p_s), axis=-1, keepdims=True)  # [bt, 1]
    partial = jnp.sum(row_num / st)  # scalar partial for this tile

    # Lane-dense (1, 128) store; only lane 0 carries the value.
    lane = jax.lax.broadcasted_iota(jnp.int32, (1, 128), dimension=1)
    out_ref[...] = jnp.where(lane == 0, partial, 0.0)


def distill_kl(y_s, y_t, temperature, *, batch_tile=None):
    """Pallas implementation of DistillKL.forward. y_s, y_t: [B, C] (f32 or bf16)."""
    assert y_s.shape == y_t.shape and y_s.ndim == 2
    B, C = y_s.shape
    itemsize = jnp.dtype(y_s.dtype).itemsize

    if batch_tile is None:
        batch_tile = _choose_batch_tile(B, C, itemsize)

    # Zero-pad the batch so B divides evenly into tiles. Zero rows produce
    # identical student/teacher distributions, so their KL contribution is
    # exactly 0 and needs no masking.
    B_pad = _round_up(B, batch_tile)
    if B_pad != B:
        pad = ((0, B_pad - B), (0, 0))
        y_s = jnp.pad(y_s, pad)
        y_t = jnp.pad(y_t, pad)
    num_tiles = B_pad // batch_tile

    # TODO(synk): for vocab-scale C, add a class-dim grid axis with a two-pass /
    # online-softmax formulation instead of requiring the full class row per block.
    # TODO(synk): for C << 128 at large B, fold batch into the lane dim for lane density.

    kernel = functools.partial(_distill_kl_kernel, inv_t=1.0 / float(temperature))

    partials = pl.pallas_call(
        kernel,
        out_shape=jax.ShapeDtypeStruct((num_tiles, 128), jnp.float32),
        grid_spec=pltpu.PrefetchScalarGridSpec(
            num_scalar_prefetch=0,
            grid=(num_tiles,),
            in_specs=[
                pl.BlockSpec((batch_tile, C), lambda i: (i, 0)),
                pl.BlockSpec((batch_tile, C), lambda i: (i, 0)),
            ],
            # Each grid step owns its own output row -> no cross-step RMW,
            # so the grid axis can legally be "parallel" (2 TCs on v7x).
            out_specs=pl.BlockSpec((1, 128), lambda i: (i, 0)),
        ),
        compiler_params=pltpu.CompilerParams(
            dimension_semantics=("parallel",),
            vmem_limit_bytes=32 * 1024 * 1024,
        ),
    )(y_s, y_t)

    # Final reduction + scaling on the host-side JAX graph (tiny).
    return jnp.sum(partials) * (float(temperature) ** 2) / B


def _reference(y_s, y_t, T):
    ys = y_s.astype(jnp.float32) / T
    yt = y_t.astype(jnp.float32) / T
    log_p_s = jax.nn.log_softmax(ys, axis=1)
    p_t = jax.nn.softmax(yt, axis=1)
    log_p_t = jax.nn.log_softmax(yt, axis=1)
    return jnp.sum(p_t * (log_p_t - log_p_s)) * (T ** 2) / y_s.shape[0]


if __name__ == "__main__":
    T = 4.0
    key = jax.random.PRNGKey(0)

    # Case 1: small f32 shapes matching the module's typical use (batch=8, classes=32).
    k1, k2, k3, k4, k5, k6 = jax.random.split(key, 6)
    y_s = jax.random.normal(k1, (8, 32), dtype=jnp.float32)
    y_t = jax.random.normal(k2, (8, 32), dtype=jnp.float32)
    loss = jax.block_until_ready(distill_kl(y_s, y_t, T))
    ref = _reference(y_s, y_t, T)
    assert jnp.allclose(loss, ref, rtol=1e-5, atol=1e-5), (loss, ref)

    # Case 2: batch not divisible by the tile (exercises zero-padding path).
    y_s2 = jax.random.normal(k3, (10, 32), dtype=jnp.float32)
    y_t2 = jax.random.normal(k4, (10, 32), dtype=jnp.float32)
    loss2 = jax.block_until_ready(distill_kl(y_s2, y_t2, T))
    ref2 = _reference(y_s2, y_t2, T)
    assert jnp.allclose(loss2, ref2, rtol=1e-5, atol=1e-5), (loss2, ref2)

    # Case 3: bf16 logits (halved HBM traffic path), cast to f32 inside the kernel.
    y_s3 = jax.random.normal(k5, (24, 160), dtype=jnp.float32).astype(jnp.bfloat16)
    y_t3 = jax.random.normal(k6, (24, 160), dtype=jnp.float32).astype(jnp.bfloat16)
    loss3 = jax.block_until_ready(distill_kl(y_s3, y_t3, T))
    ref3 = _reference(y_s3, y_t3, T)
    assert jnp.allclose(loss3, ref3, rtol=1e-4, atol=1e-4), (loss3, ref3)

    print("KERNEL_OK")
</pallas_src>

<mosaic_0001>
module attributes {stable_mosaic.version = 11 : i64} {
  func.func @_distill_kl_kernel(%arg0: i32, %arg1: memref<8x32xf32, #tpu.memory_space<vmem>>, %arg2: memref<8x32xf32, #tpu.memory_space<vmem>>, %arg3: memref<1x128xf32, #tpu.memory_space<vmem>>) attributes {dimension_semantics = [#tpu.dimension_semantics<parallel>], iteration_bounds = array<i64: 1>, scalar_prefetch = 0 : i64, scratch_operands = 0 : i64, tpu.core_type = #tpu.core_type<tc>, window_params = [{transform_indices = @transform_0, window_bounds = array<i64: 8, 32>}, {transform_indices = @transform_1, window_bounds = array<i64: 8, 32>}, {transform_indices = @transform_2, window_bounds = array<i64: 1, 128>}]} {
    %c0 = arith.constant 0 : index
    %c0_0 = arith.constant 0 : index
    %0 = vector.load %arg1[%c0, %c0_0] : memref<8x32xf32, #tpu.memory_space<vmem>>, vector<8x32xf32>
    %cst = arith.constant 2.500000e-01 : f32
    %1 = vector.broadcast %cst : f32 to vector<8x32xf32>
    %2 = arith.mulf %0, %1 : vector<8x32xf32>
    %c0_1 = arith.constant 0 : index
    %c0_2 = arith.constant 0 : index
    %3 = vector.load %arg2[%c0_1, %c0_2] : memref<8x32xf32, #tpu.memory_space<vmem>>, vector<8x32xf32>
    %cst_3 = arith.constant 2.500000e-01 : f32
    %4 = vector.broadcast %cst_3 : f32 to vector<8x32xf32>
    %5 = arith.mulf %3, %4 : vector<8x32xf32>
    %cst_4 = arith.constant dense<0xFF800000> : vector<8xf32>
    %6 = vector.multi_reduction <maximumf>, %2, %cst_4 [1] : vector<8x32xf32> to vector<8xf32>
    %7 = vector.shape_cast %6 : vector<8xf32> to vector<8x1xf32>
    %8 = vector.broadcast %7 : vector<8x1xf32> to vector<8x32xf32>
    %9 = arith.subf %2, %8 : vector<8x32xf32>
    %10 = math.exp %9 : vector<8x32xf32>
    %cst_5 = arith.constant dense<0.000000e+00> : vector<8xf32>
    %11 = vector.multi_reduction <add>, %10, %cst_5 [1] : vector<8x32xf32> to vector<8xf32>
    %12 = vector.shape_cast %11 : vector<8xf32> to vector<8x1xf32>
    %13 = math.log %12 : vector<8x1xf32>
    %14 = vector.broadcast %13 : vector<8x1xf32> to vector<8x32xf32>
    %15 = arith.subf %9, %14 : vector<8x32xf32>
    %cst_6 = arith.constant dense<0xFF800000> : vector<8xf32>
    %16 = vector.multi_reduction <maximumf>, %5, %cst_6 [1] : vector<8x32xf32> to vector<8xf32>
    %17 = vector.shape_cast %16 : vector<8xf32> to vector<8x1xf32>
    %18 = vector.broadcast %17 : vector<8x1xf32> to vector<8x32xf32>
    %19 = arith.subf %5, %18 : vector<8x32xf32>
    %20 = math.exp %19 : vector<8x32xf32>
    %cst_7 = arith.constant dense<0.000000e+00> : vector<8xf32>
    %21 = vector.multi_reduction <add>, %20, %cst_7 [1] : vector<8x32xf32> to vector<8xf32>
    %22 = vector.shape_cast %21 : vector<8xf32> to vector<8x1xf32>
    %23 = math.log %22 : vector<8x1xf32>
    %24 = vector.broadcast %23 : vector<8x1xf32> to vector<8x32xf32>
    %25 = arith.subf %19, %24 : vector<8x32xf32>
    %26 = arith.subf %25, %15 : vector<8x32xf32>
    %27 = arith.mulf %20, %26 : vector<8x32xf32>
    %cst_8 = arith.constant dense<0.000000e+00> : vector<8xf32>
    %28 = vector.multi_reduction <add>, %27, %cst_8 [1] : vector<8x32xf32> to vector<8xf32>
    %29 = vector.shape_cast %28 : vector<8xf32> to vector<8x1xf32>
    %30 = arith.divf %29, %22 : vector<8x1xf32>
    %31 = vector.shape_cast %30 : vector<8x1xf32> to vector<1x8x1xf32>
    %cst_9 = arith.constant dense<0.000000e+00> : vector<1xf32>
    %32 = vector.multi_reduction <add>, %31, %cst_9 [1, 2] : vector<1x8x1xf32> to vector<1xf32>
    %33 = vector.shape_cast %32 : vector<1xf32> to vector<1x1x1xf32>
    %34 = vector.extract %33[0, 0, 0] : f32 from vector<1x1x1xf32>
    %35 = tpu.iota {dimensions = array<i32: 1>} : vector<1x128xi32>
    %c0_i32 = arith.constant 0 : i32
    %36 = vector.broadcast %c0_i32 : i32 to vector<1x128xi32>
    %37 = arith.cmpi eq, %35, %36 : vector<1x128xi32>
    %cst_10 = arith.constant 0.000000e+00 : f32
    %38 = vector.broadcast %34 : f32 to vector<1x128xf32>
    %39 = vector.broadcast %cst_10 : f32 to vector<1x128xf32>
    %40 = arith.select %37, %38, %39 : vector<1x128xi1>, vector<1x128xf32>
    %c0_11 = arith.constant 0 : index
    %c0_12 = arith.constant 0 : index
    %41 = vector.load %arg3[%c0_11, %c0_12] : memref<1x128xf32, #tpu.memory_space<vmem>>, vector<1x128xf32>
    tpu.vector_store %arg3[%c0_11, %c0_12], %40 {strides = array<i32>} : memref<1x128xf32, #tpu.memory_space<vmem>>, vector<1x128xf32>,
    return
  }
  func.func @transform_0(%arg0: i32) -> (i32, i32) {
    %c0_i32 = arith.constant 0 : i32
    %c0_i32_0 = arith.constant 0 : i32
    return %arg0, %c0_i32 : i32, i32
  }
  func.func @transform_1(%arg0: i32) -> (i32, i32) {
    %c0_i32 = arith.constant 0 : i32
    %c0_i32_0 = arith.constant 0 : i32
    return %arg0, %c0_i32 : i32, i32
  }
  func.func @transform_2(%arg0: i32) -> (i32, i32) {
    %c0_i32 = arith.constant 0 : i32
    %c0_i32_0 = arith.constant 0 : i32
    return %arg0, %c0_i32 : i32, i32
  }
}

</mosaic_0001>

<bundles_post_ra>
// kernel: tpu_custom_call.1
= control target key start
LH: loop header
LB: loop body
LE: loop exit
PB: predicated region body
PF: predicated region fallthrough
CT: control target
= control target key end

     0   :  { %7 = vsyncpa [#allocation3], 0  ;;  %s251_s0 = inlined_call_operand.hbm [shape: f32[8,32], index: 0, kind: input, shape index: {}]   ;;  %s252_s1 = inlined_call_operand.hbm [shape: f32[8,32], index: 1, kind: input, shape index: {}]   ;;  %s253_s2 = inlined_call_operand.hbm [shape: f32[1,128], index: 2, kind: output, shape index: {}]  }
   0x1   :  { %8 = vsyncpa [#allocation6], 0 }
   0x2   :  { %9 = vsyncpa [#allocation4], 0  ;;  %s192_s9 = smov [#allocation2]   ;;  %s193_s11 = smov [#allocation5]  }
   0x3   :  { %s16_s10 = sshll.u32 %s192_s9, 4  ;;  %s26_s12 = sshll.u32 %s193_s11, 4  ;;  %s17_s10 = int_to_ptr.vmem [resolvable:$true] %s16_s10  ;;  %s27_s12 = int_to_ptr.vmem [resolvable:$true] %s26_s12 }
   0x4   :  { %s120_s15 = scalar_lea.hbm %s251_s0, 128 }
   0x5   :  { %p121_p0 = scmp.ne.s32.totalorder %s251_s0, %s120_s15  ;;  %p124_p1 = scmp.lt.u32.totalorder %s120_s15, %s251_s0 }
   0x7   :  { %p126_p2 = pnand %p124_p1, %p121_p0 }
   0x9   :  { %129 = shalt.err (!%p126_p2)
}
   0xa   :  { %s130_s20 = scalar_lea.vmem %s17_s10, 128  ;;  %p135_p4 = scmp.lt.s32.totalorder %s17_s10, %s17_s10 }
   0xb   :  { %p131_p3 = scmp.ne.s32.totalorder %s17_s10, %s130_s20  ;;  %p136_p5 = scmp.lt.s32.totalorder %s130_s20, %s130_s20 }
   0xd   :  { %p137_p6 = por %p136_p5, %p135_p4 }
   0xf   :  { %p138_p7 = pnand %p137_p6, %p131_p3 }
  0x11   :  { %141 = shalt.err (!%p138_p7)
}
  0x12   :  { %19 = dma.hbm_to_vmem [thread:$0]  %s251_s0, 128, %s17_s10, [#allocation3]  }
  0x13   :  { %s142_s25 = scalar_lea.hbm %s252_s1, 128 }
  0x14   :  { %p143_p8 = scmp.ne.s32.totalorder %s252_s1, %s142_s25  ;;  %p146_p9 = scmp.lt.u32.totalorder %s142_s25, %s252_s1 }
  0x16   :  { %p148_p10 = pnand %p146_p9, %p143_p8 }
  0x18   :  { %151 = shalt.err (!%p148_p10)
}
  0x19   :  { %s152_s30 = scalar_lea.vmem %s27_s12, 128  ;;  %p157_p12 = scmp.lt.s32.totalorder %s27_s12, %s27_s12 }
  0x1a   :  { %p153_p11 = scmp.ne.s32.totalorder %s27_s12, %s152_s30  ;;  %p158_p13 = scmp.lt.s32.totalorder %s152_s30, %s152_s30 }
  0x1c   :  { %p159_p0 = por %p158_p13, %p157_p12 }
  0x1e   :  { %p160_p1 = pnand %p159_p0, %p153_p11 }
  0x20   :  { %163 = shalt.err (!%p160_p1)
}
  0x21   :  { %29 = dma.hbm_to_vmem [thread:$0]  %s252_s1, 128, %s27_s12, [#allocation6]  }
  0x22   :  { %186 = dma.done.wait [#allocation3], 128  }
  0x23   :  { %187 = vsyncadd [#allocation3], 4294967168 }
  0x24   :  { %188 = dma.done.wait [#allocation6], 128  }
  0x25   :  { %189 = vsyncadd [#allocation6], 4294967168  ;;  %v36_v0 = vld [vmem:[#allocation2] sm:$0xff]  ;;  %vm40_vm0 = vcmask 261120   ;;  %v38_v1 = vld [vmem:[#allocation5] sm:$0xff]  ;;  %vm72_vm1 = vcmask 7168   ;;  %v83_v38 = vlaneseq }
  0x26   :  { %v37_v2 = vmul.f32 0.25, %v36_v0  ;;  %v39_v3 = vmul.f32 0.25, %v38_v1  ;;  %s194_s1 = smov [#allocation7]  }
  0x27   :  { %v84_v39 = vand.u32 127, %v83_v38  ;;  %s95_s4 = sshll.u32 %s194_s1, 4  ;;  %s96_s4 = int_to_ptr.vmem [resolvable:$true] %s95_s4 }
  0x28   :  { %v41_v4 = vsel %vm40_vm0, %v37_v2, -inf  ;;  %v53_v5 = vsel %vm40_vm0, %v39_v3, -inf  ;;  %s164_s6 = scalar_lea.vmem %s96_s4, 16  ;;  %s168_s7 = scalar_lea.vmem %s96_s4, 32 }
  0x29   :  { %42 = vmax.xlane.f32.xlu0 %v41_v4  ;;  %vm85_vm2 = vcmp.eq.s32.totalorder %v84_v39, 0  ;;  %p165_p2 = scmp.ne.s32.totalorder %s96_s4, %s164_s6  ;;  %p169_p3 = scmp.lt.s32.totalorder %s96_s4, %s96_s4 }
  0x2a   :  { %p170_p4 = scmp.lt.s32.totalorder %s168_s7, %s164_s6 }
  0x2c   :  { %p171_p5 = por %p170_p4, %p169_p3 }
  0x2d   :  { %54 = vmax.xlane.f32.xlu0 %v53_v5 }
  0x2e   :  { %p172_p6 = pnand %p171_p5, %p165_p2 }
  0xb6   :  { %v43_v6 = vpop.xlane.xlu0 %42 }
  0xb7   :  { %v44_v7 = vsub.f32 %v37_v2, %v43_v6 }
  0xb9   :  { %v45_v8 = vmul.f32 1.442695, %v44_v7 }
  0xba   :  { %v55_v9 = vpop.xlane.xlu0 %54 }
  0xbb   :  { %110 = vpow2.f32 %v45_v8  ;;  %v56_v10 = vsub.f32 %v39_v3, %v55_v9 }
  0xbd   :  { %v57_v11 = vmul.f32 1.442695, %v56_v10 }
  0xbf   :  { %112 = vpow2.f32 %v57_v11 }
  0xc5   :  { %v111_v12 = vpop.eup %110 }
  0xc6   :  { %v47_v13 = vsel %vm40_vm0, %v111_v12, 0.0 }
  0xc7   :  { %48 = vadd.xlane.f32.xlu1 %v47_v13 }
  0xc9   :  { %v113_v14 = vpop.eup %112 }
  0xca   :  { %v59_v15 = vsel %vm40_vm0, %v113_v14, 0.0 }
  0xcb   :  { %60 = vadd.xlane.f32.xlu1 %v59_v15 }
 0x154   :  { %v49_v16 = vpop.xlane.xlu1 %48 }
 0x155   :  { %114 = vlog2.f32 %v49_v16 }
 0x158   :  { %v61_v17 = vpop.xlane.xlu1 %60 }
 0x159   :  { %116 = vlog2.f32 %v61_v17 }
 0x15a   :  { %118 = vrcp.f32 %v61_v17 }
 0x15f   :  { %v115_v18 = vpop.eup %114 }
 0x160   :  { %v51_v19 = vmul.f32 0.6931472, %v115_v18 }
 0x162   :  { %v52_v22 = vsub.f32 %v44_v7, %v51_v19 }
 0x163   :  { %v117_v20 = vpop.eup %116 }
 0x164   :  { %v63_v21 = vmul.f32 0.6931472, %v117_v20  ;;  %v119_v27 = vpop.eup %118 }
 0x166   :  { %v64_v23 = vsub.f32 %v56_v10, %v63_v21 }
 0x168   :  { %v65_v24 = vsub.f32 %v64_v23, %v52_v22 }
 0x16a   :  { %v66_v25 = vmul.f32 %v113_v14, %v65_v24 }
 0x16c   :  { %v67_v26 = vsel %vm40_vm0, %v66_v25, 0.0 }
 0x16d   :  { %68 = vadd.xlane.f32.xlu0 %v67_v26 }
 0x1fa   :  { %v69_v28 = vpop.xlane.xlu0 %68 }
 0x1fb   :  { %v71_v29 = vmul.f32 %v119_v27, %v69_v28 }
 0x1fd   :  { %v73_v30 = vsel %vm72_vm1, %v71_v29, 0.0 }
 0x1fe   :  { %74 = vadd.xlane.f32.xlu1 %v73_v30 }
 0x28b   :  { %v75_v31 = vpop.xlane.xlu1 %74 }
 0x28c   :  { %v76_v32 = vrot.slane %v75_v31, 4 }
 0x28e   :  { %v77_v33 = vadd.f32 %v76_v32, %v75_v31 }
 0x290   :  { %v78_v34 = vrot.slane %v77_v33, 2 }
 0x292   :  { %v79_v35 = vadd.f32 %v78_v34, %v77_v33 }
 0x294   :  { %v80_v36 = vrot.slane %v79_v35, 1 }
 0x296   :  { %v81_v37 = vadd.f32 %v80_v36, %v79_v35 }
 0x298   :  { %105 = vpush %v81_v37 }
 0x2c9   :  { %s106_s5 = spop %105 }
 0x2ca   :  { %v86_v40 = vstv %s106_s5 }
 0x2cb   :  { %v87_v41 = vsel %vm85_vm2, %v86_v40, 0.0 }
 0x2cc   :  { %88 = vst [vmem:[#allocation7] sm:$0x1] %v87_v41 }
 0x2cd   :  { %175 = shalt.err (!%p172_p6)
}
 0x2ce   :  { %s176_s10 = scalar_lea.hbm %s253_s2, 16 }
 0x2cf   :  { %p177_p7 = scmp.ne.s32.totalorder %s253_s2, %s176_s10  ;;  %p180_p8 = scmp.lt.u32.totalorder %s176_s10, %s253_s2 }
 0x2d1   :  { %p182_p9 = pnand %p180_p8, %p177_p7 }
 0x2d3   :  { %185 = shalt.err (!%p182_p9)
}
 0x2d4   :  { %98 = dma.vmem_to_hbm [thread:$0]  %s96_s4, 16, %s253_s2, [#allocation4]  }
 0x2d5   :  { %190 = dma.done.wait [#allocation4], 16  }
 0x2d6   :  { %191 = vsyncadd [#allocation4], 4294967280 }
 0x2d7   :  { %102 = vsyncpa [#allocation3], 1 }
 0x2d8   :  { %103 = vsyncpa [#allocation6], 1 }
 0x2d9   :  { %104 = vsyncpa [#allocation4], 1 }

</bundles_post_ra>
